<compile_context>
chip_gen: v5e
topology: v5e:2x2
jax: 0.10.0
libtpu: 0.0.40
codegen_flags: <defaults>
</compile_context>

<pallas_src>
import math

import jax
import jax.numpy as jnp
from jax.experimental import pallas as pl
from jax.experimental.pallas import tpu as pltpu


def _make_divisible(v, divisor, min_value=None):
    # Exact replica of the PyTorch-side helper (including its quirky formula).
    if min_value is None:
        min_value = divisor
    new_v = max(min_value, int(v + divisor / 2) // (divisor * divisor + 1e-08))
    if new_v < 0.9 * v:
        new_v += divisor
    return new_v


def _se_kernel(x_ref, p_ref, o_ref):
    """x_ref/o_ref: (NC, HW); p_ref: (2*NC + 1, NCr + 1) packed params."""
    nc = x_ref.shape[0]

    x = x_ref[...]                                              # (NC, HW) f32

    # AdaptiveAvgPool2d(1): mean over spatial positions (lane reduce).
    pooled = jnp.mean(x, axis=1, keepdims=True)                 # (NC, 1)

    w1t = p_ref[0:nc, :]                # (NC, NCr+1)  [W1^T blkdiag | 0 ]
    w2e = p_ref[nc:2 * nc, :]           # (NC, NCr+1)  [W2  blkdiag  | b2]
    b1e = p_ref[2 * nc:2 * nc + 1, :]   # (1,  NCr+1)  [b1           | 1 ]

    # conv_reduce (1x1) + ReLU for all images at once (VPU broadcast-multiply
    # + XLU sublane reduce; block-diag keeps images independent).  Trailing
    # lane is relu(0 + 1) = 1, which carries b2 through the next reduce.
    y1 = jnp.maximum(jnp.sum(pooled * w1t, axis=0, keepdims=True) + b1e, 0.0)

    # conv_expand (1x1) + b2 (via the constant-1 lane): lane reduce -> logits.
    y2 = jnp.sum(w2e * y1, axis=1, keepdims=True)               # (NC, 1)

    # hard_sigmoid gate: relu6(y + 3) / 6, then per-row rescale of x.
    gate = jnp.clip(y2 + 3.0, 0.0, 6.0) * (1.0 / 6.0)           # (NC, 1)
    o_ref[...] = (x * gate).astype(o_ref.dtype)


def pack_se_params(w1, b1, w2, b2, batch):
    """Pack SE weights for `squeeze_excite`.  Call ONCE per layer, not per step.

    w1: (Cr, C) conv_reduce weight; b1: (Cr,); w2: (C, Cr) conv_expand weight;
    b2: (C,).  Returns a (2*N*C + 1, N*Cr + 1) f32 slab.
    """
    cr, c = w1.shape
    n = batch
    nc, ncr = n * c, n * cr

    # TODO(synk): for realistic batch/C the kron slab is O(N^2) with only N
    # non-zero blocks; once C >= 128, switch the kernel to MXU matmuls on an
    # (N, C) pooled tile and pass w1/w2 unreplicated instead of block-diag.
    eye_n = jnp.eye(n, dtype=jnp.float32)
    w1t_bd = jnp.kron(eye_n, w1.T.astype(jnp.float32))          # (NC, NCr)
    w2_bd = jnp.kron(eye_n, w2.astype(jnp.float32))             # (NC, NCr)
    b1_row = jnp.tile(b1.astype(jnp.float32), n).reshape(1, ncr)
    b2_col = jnp.tile(b2.astype(jnp.float32), n).reshape(nc, 1)

    top = jnp.concatenate([w1t_bd, jnp.zeros((nc, 1), jnp.float32)], axis=1)
    mid = jnp.concatenate([w2_bd, b2_col], axis=1)
    bot = jnp.concatenate([b1_row, jnp.ones((1, 1), jnp.float32)], axis=1)
    return jnp.concatenate([top, mid, bot], axis=0)             # (2NC+1, NCr+1)


def squeeze_excite(x_nchw, packed_params):
    """x_nchw: (N, C, H, W); packed_params from pack_se_params(...)."""
    N, C, H, W = x_nchw.shape
    NC, HW = N * C, H * W

    # Batch folded into sublanes, spatial on lanes (HW=256 -> lane-dense,
    # unmasked vector stores).
    # TODO(synk): for production SE shapes (large C*H*W) tile NC x HW with a
    # fused pool+scale grid (pl.when init/finalize, pooled/gate in VMEM
    # scratch so x is streamed once), mark the NC axis "parallel" for v7x's
    # 2 TCs, size tiles against v7x's 64 MiB VMEM via vmem_limit_bytes, and
    # pad/fold HW so the output block stays a multiple of 128 lanes.
    x_flat = x_nchw.reshape(NC, HW)

    out_flat = pl.pallas_call(
        _se_kernel,
        out_shape=jax.ShapeDtypeStruct((NC, HW), x_nchw.dtype),
        # grid=() -> single invocation, whole arrays resident in VMEM, no
        # software-pipeline double-buffering for this one-shot kernel.
        in_specs=[
            pl.BlockSpec(memory_space=pltpu.MemorySpace.VMEM),
            pl.BlockSpec(memory_space=pltpu.MemorySpace.VMEM),
        ],
        out_specs=pl.BlockSpec(memory_space=pltpu.MemorySpace.VMEM),
        # Pure rescale of x: aliasing lets a donating caller reuse x's HBM
        # buffer; non-donating callers get a compiler-inserted copy instead.
        input_output_aliases={0: 0},
    )(x_flat, packed_params)

    return out_flat.reshape(N, C, H, W)


def squeeze_excite_ref(x, w1, b1, w2, b2):
    """Plain-JAX reference mirroring the PyTorch forward (NCHW)."""
    pooled = jnp.mean(x, axis=(2, 3))                           # (N, C)
    y1 = jnp.maximum(pooled @ w1.T + b1, 0.0)                   # (N, Cr)
    y2 = y1 @ w2.T + b2                                         # (N, C)
    gate = jnp.clip(y2 + 3.0, 0.0, 6.0) / 6.0                   # (N, C)
    return x * gate[:, :, None, None]


if __name__ == "__main__":
    # Shapes consistent with the module: batch=2, in_chs=4, spatial=16x16.
    N, C, H, W = 2, 4, 16, 16
    se_ratio, divisor = 0.25, 4
    Cr = int(_make_divisible(C * se_ratio, divisor))            # = 4 for C=4

    key = jax.random.PRNGKey(0)
    kx, k1, k2, k3, k4 = jax.random.split(key, 5)

    x = jax.random.normal(kx, (N, C, H, W), dtype=jnp.float32)

    # Deterministic parameter init (1x1 conv weights flattened to matrices).
    w_reduce = jax.random.normal(k1, (Cr, C), dtype=jnp.float32) / math.sqrt(C)
    b_reduce = 0.1 * jax.random.normal(k2, (Cr,), dtype=jnp.float32)
    w_expand = jax.random.normal(k3, (C, Cr), dtype=jnp.float32) / math.sqrt(Cr)
    b_expand = 0.1 * jax.random.normal(k4, (C,), dtype=jnp.float32)

    # Reference first (defensive ordering w.r.t. the input/output alias).
    ref = squeeze_excite_ref(x, w_reduce, b_reduce, w_expand, b_expand)

    # Pack once per layer (hoisted off the per-forward path), then run.
    params = pack_se_params(w_reduce, b_reduce, w_expand, b_expand, batch=N)
    out = squeeze_excite(x, params)
    out = jax.block_until_ready(out)

    assert out.shape == (N, C, H, W)
    assert jnp.allclose(out, ref, atol=1e-5, rtol=1e-5), "mismatch vs reference"

    print("KERNEL_OK")
</pallas_src>

<mosaic_0001>
module attributes {stable_mosaic.version = 11 : i64} {
  func.func @_se_kernel(%arg0: memref<8x256xf32, #tpu.memory_space<vmem>>, %arg1: memref<17x9xf32, #tpu.memory_space<vmem>>, %arg2: memref<8x256xf32, #tpu.memory_space<vmem>>) attributes {dimension_semantics = [], scalar_prefetch = 0 : i64, scratch_operands = 0 : i64, tpu.core_type = #tpu.core_type<tc>} {
    %c0 = arith.constant 0 : index
    %c0_0 = arith.constant 0 : index
    %0 = vector.load %arg0[%c0, %c0_0] : memref<8x256xf32, #tpu.memory_space<vmem>>, vector<8x256xf32>
    %cst = arith.constant dense<0.000000e+00> : vector<8xf32>
    %1 = vector.multi_reduction <add>, %0, %cst [1] : vector<8x256xf32> to vector<8xf32>
    %2 = vector.shape_cast %1 : vector<8xf32> to vector<8x1xf32>
    %cst_1 = arith.constant 2.560000e+02 : f32
    %3 = vector.broadcast %cst_1 : f32 to vector<8x1xf32>
    %4 = arith.divf %2, %3 : vector<8x1xf32>
    %c0_2 = arith.constant 0 : index
    %c0_3 = arith.constant 0 : index
    %5 = vector.load %arg1[%c0_2, %c0_3] : memref<17x9xf32, #tpu.memory_space<vmem>>, vector<8x9xf32>
    %c8 = arith.constant 8 : index
    %c0_4 = arith.constant 0 : index
    %6 = vector.load %arg1[%c8, %c0_4] : memref<17x9xf32, #tpu.memory_space<vmem>>, vector<8x9xf32>
    %c16 = arith.constant 16 : index
    %c0_5 = arith.constant 0 : index
    %7 = vector.load %arg1[%c16, %c0_5] : memref<17x9xf32, #tpu.memory_space<vmem>>, vector<1x9xf32>
    %8 = vector.broadcast %4 : vector<8x1xf32> to vector<8x9xf32>
    %9 = arith.mulf %8, %5 : vector<8x9xf32>
    %cst_6 = arith.constant dense<0.000000e+00> : vector<9xf32>
    %10 = vector.multi_reduction <add>, %9, %cst_6 [0] : vector<8x9xf32> to vector<9xf32>
    %11 = vector.shape_cast %10 : vector<9xf32> to vector<1x9xf32>
    %12 = arith.addf %11, %7 : vector<1x9xf32>
    %cst_7 = arith.constant 0.000000e+00 : f32
    %13 = vector.broadcast %cst_7 : f32 to vector<1x9xf32>
    %14 = arith.maximumf %12, %13 : vector<1x9xf32>
    %15 = vector.broadcast %14 : vector<1x9xf32> to vector<8x9xf32>
    %16 = arith.mulf %6, %15 : vector<8x9xf32>
    %cst_8 = arith.constant dense<0.000000e+00> : vector<8xf32>
    %17 = vector.multi_reduction <add>, %16, %cst_8 [1] : vector<8x9xf32> to vector<8xf32>
    %18 = vector.shape_cast %17 : vector<8xf32> to vector<8x1xf32>
    %cst_9 = arith.constant 3.000000e+00 : f32
    %19 = vector.broadcast %cst_9 : f32 to vector<8x1xf32>
    %20 = arith.addf %18, %19 : vector<8x1xf32>
    %cst_10 = arith.constant 0.000000e+00 : f32
    %cst_11 = arith.constant 6.000000e+00 : f32
    %21 = vector.broadcast %cst_10 : f32 to vector<8x1xf32>
    %22 = arith.maximumf %21, %20 : vector<8x1xf32>
    %23 = vector.broadcast %cst_11 : f32 to vector<8x1xf32>
    %24 = arith.minimumf %23, %22 : vector<8x1xf32>
    %cst_12 = arith.constant 0.166666672 : f32
    %25 = vector.broadcast %cst_12 : f32 to vector<8x1xf32>
    %26 = arith.mulf %24, %25 : vector<8x1xf32>
    %27 = vector.broadcast %26 : vector<8x1xf32> to vector<8x256xf32>
    %28 = arith.mulf %0, %27 : vector<8x256xf32>
    %c0_13 = arith.constant 0 : index
    %c0_14 = arith.constant 0 : index
    %29 = vector.load %arg2[%c0_13, %c0_14] : memref<8x256xf32, #tpu.memory_space<vmem>>, vector<8x256xf32>
    tpu.vector_store %arg2[%c0_13, %c0_14], %28 {strides = array<i32>} : memref<8x256xf32, #tpu.memory_space<vmem>>, vector<8x256xf32>,
    return
  }
}

</mosaic_0001>

<bundles_post_ra>
// kernel: tpu_custom_call.1
= control target key start
LH: loop header
LB: loop body
LE: loop exit
PB: predicated region body
PF: predicated region fallthrough
CT: control target
= control target key end

     0   :  { %7 = vsyncpa [#allocation3], 0  ;;  %s173_s0 = inlined_call_operand.hbm [shape: f32[8,256], index: 0, kind: input, shape index: {}, may-alias: {0,2}]   ;;  %s174_s1 = inlined_call_operand.vmem [shape: f32[17,9], index: 1, kind: input, shape index: {}]   ;;  %s175_s2 = inlined_call_operand.hbm [shape: f32[8,256], index: 2, kind: output, shape index: {}, may-alias: {0,2}]  }
   0x1   :  { %8 = vsyncpa [#allocation4], 0  ;;  %s14_s11 = sshll.u32 %s173_s0, 4  ;;  %s140_s12 = smov [#allocation2]   ;;  %s15_s11 = int_to_ptr.hbm [resolvable:$true] %s14_s11 }
   0x2   :  { %s16_s13 = sshll.u32 %s140_s12, 4  ;;  %s17_s13 = int_to_ptr.vmem [resolvable:$true] %s16_s13 }
   0x3   :  { %19 = dma.hbm_to_vmem [thread:$0]  %s15_s11, 256, %s17_s13, [#allocation3]  }
   0x4   :  { %136 = dma.done.wait [#allocation3], 256  }
   0x5   :  { %137 = vsyncadd [#allocation3], 4294967040  ;;  %v26_v0 = vld [vmem:[#allocation2] sm:$0xff]  ;;  %v27_v1 = vld [vmem:[#allocation2 + $0x8] sm:$0xff]  ;;  %v141_v3 = vmov 256.0   ;;  %vm43_vm1 = vcmask 72704  }
   0x6   :  { %v28_v2 = vadd.f32 %v27_v1, %v26_v0  ;;  %86 = vrcp.f32 %v141_v3  ;;  %v39_v10 = vld [vmem:[%s174_s1] sm:$0xff]  ;;  %v41_v20 = vld [vmem:[%s174_s1 + $0x10] sm:$0x1]  ;;  %v40_v24 = vld [vmem:[%s174_s1 + $0x8] sm:$0xff]  ;;  %s142_s19 = smov [#allocation5]   ;;  %s73_s23 = sshll.u32 %s175_s2, 4  ;;  %s74_s23 = int_to_ptr.hbm [resolvable:$true] %s73_s23 }
   0x7   :  { %s71_s20 = sshll.u32 %s142_s19, 4  ;;  %s72_s20 = int_to_ptr.vmem [resolvable:$true] %s71_s20 }
   0x8   :  { %29 = vadd.xlane.f32.xlu0 %v28_v2 }
   0xc   :  { %v87_v4 = vpop.eup %86 }
   0xd   :  { %v32_v5 = vmul.f32 256.0, %v87_v4  ;;  %vm36_vm0 = vweird.f32 %v87_v4 }
   0xf   :  { %v33_v6 = vsub.f32 1.0, %v32_v5 }
  0x11   :  { %v34_v7 = vmul.f32 %v87_v4, %v33_v6 }
  0x13   :  { %v35_v8 = vadd.f32 %v87_v4, %v34_v7 }
  0x15   :  { %v37_v9 = vsel %vm36_vm0, %v87_v4, %v35_v8 }
  0x7b   :  { %v30_v11 = vpop.xlane.xlu0 %29 }
  0x7c   :  { %v38_v12 = vmul.f32 %v37_v9, %v30_v11 }
  0x7e   :  { %v42_v13 = vmul.f32 %v39_v10, %v38_v12 }
  0x80   :  { %v44_v14 = vsel %vm43_vm1, %v42_v13, 0.0 }
  0x81   :  { %v45_v15 = vrot.slane %v44_v14, 4 }
  0x83   :  { %v46_v16 = vadd.f32 %v45_v15, %v44_v14 }
  0x85   :  { %v47_v17 = vrot.slane %v46_v16, 2 }
  0x87   :  { %v48_v18 = vadd.f32 %v47_v17, %v46_v16 }
  0x89   :  { %v49_v19 = vrot.slane %v48_v18, 1 }
  0x8b   :  { %v50_v21 = vadd.f32 %v49_v19, %v48_v18 }
  0x8d   :  { %v51_v22 = vadd.f32 %v50_v21, %v41_v20 }
  0x8f   :  { %v52_v23 = vmax.f32 %v51_v22, 0.0 }
  0x91   :  { %v53_v25 = vperm.slane %v52_v23, 0 }
  0x93   :  { %v54_v26 = vmul.f32 %v53_v25, %v40_v24 }
  0x95   :  { %v55_v27 = vsel %vm43_vm1, %v54_v26, 0.0 }
  0x96   :  { %56 = vadd.xlane.f32.xlu0 %v55_v27 }
 0x109   :  { %v57_v28 = vpop.xlane.xlu0 %56 }
 0x10a   :  { %v58_v29 = vadd.f32 3.0, %v57_v28 }
 0x10c   :  { %v59_v30 = vmax.f32 %v58_v29, 0.0 }
 0x10e   :  { %v60_v31 = vmin.f32 %v59_v30, 6.0 }
 0x110   :  { %v61_v32 = vmul.f32 0.16666667, %v60_v31 }
 0x112   :  { %v62_v33 = vmul.f32 %v61_v32, %v26_v0  ;;  %v63_v34 = vmul.f32 %v61_v32, %v27_v1 }
 0x114   :  { %64 = vst [vmem:[#allocation5] sm:$0xff] %v62_v33 }
 0x115   :  { %65 = vst [vmem:[#allocation5 + $0x8] sm:$0xff] %v63_v34 }
 0x116   :  { %76 = dma.vmem_to_hbm [thread:$0]  %s72_s20, 256, %s74_s23, [#allocation4]  }
 0x117   :  { %138 = dma.done.wait [#allocation4], 256  }
 0x118   :  { %139 = vsyncadd [#allocation4], 4294967040 }
 0x119   :  { %81 = vsyncpa [#allocation3], 1 }
 0x11a   :  { %82 = vsyncpa [#allocation4], 1 }

</bundles_post_ra>
